<compile_context>
chip_gen: v7x
topology: tpu7x:2x2x1
jax: 0.10.0
libtpu: 0.0.40
codegen_flags: <defaults>
</compile_context>

<pallas_src>
import functools
import math

import jax
import jax.numpy as jnp
from jax.experimental import pallas as pl
from jax.experimental.pallas import tpu as pltpu


# --------------------------------------------------------------------------- #
# LightGCN: tiled adjacency @ embeddings, one pass per layer.
# --------------------------------------------------------------------------- #

def _gcn_layer_kernel(adj_ref, e_ref, acc_in_ref, e_out_ref, acc_out_ref,
                      scr_ref):
    """One propagation layer: e_next = adj @ e ; acc_next = acc + e_next."""
    k = pl.program_id(1)

    @pl.when(k == 0)
    def _():
        scr_ref[...] = jnp.zeros_like(scr_ref)

    # bf16 MXU matmul with fp32 accumulation (adjacency arrives already bf16).
    scr_ref[...] += jnp.dot(
        adj_ref[...],
        e_ref[...].astype(jnp.bfloat16),
        preferred_element_type=jnp.float32,
    )

    @pl.when(k == pl.num_programs(1) - 1)
    def _():
        e_next = scr_ref[...]
        e_out_ref[...] = e_next
        acc_out_ref[...] = acc_in_ref[...] + e_next


def _largest_tile(n, target, align):
    """Largest divisor of n that is <= target and a multiple of `align`
    (falls back to the full extent, which is always a legal block)."""
    if n <= target:
        return n
    for t in range(target, 0, -1):
        if n % t == 0 and t % align == 0:
            return t
    return n


def lightgcn(adj, ebds, num_layers, *, tm_target=512, tk_target=512):
    """sum_{l=0..L} (adj^l @ ebds), computed as L tiled matmul passes."""
    N, D = ebds.shape
    tm = _largest_tile(N, tm_target, 8)
    tk = _largest_tile(N, tk_target, 128)
    grid = (N // tm, N // tk)

    adj_bf16 = adj.astype(jnp.bfloat16)   # halve HBM traffic for the big matrix

    layer_fn = pl.pallas_call(
        _gcn_layer_kernel,
        out_shape=(jax.ShapeDtypeStruct((N, D), jnp.float32),
                   jax.ShapeDtypeStruct((N, D), jnp.float32)),
        grid_spec=pltpu.PrefetchScalarGridSpec(
            num_scalar_prefetch=0,
            grid=grid,
            in_specs=[
                pl.BlockSpec((tm, tk), lambda i, k: (i, k)),   # adjacency tile
                pl.BlockSpec((tk, D), lambda i, k: (k, 0)),    # embedding slab
                pl.BlockSpec((tm, D), lambda i, k: (i, 0)),    # running sum in
            ],
            out_specs=[
                pl.BlockSpec((tm, D), lambda i, k: (i, 0)),    # e_next
                pl.BlockSpec((tm, D), lambda i, k: (i, 0)),    # acc_next
            ],
            scratch_shapes=[pltpu.VMEM((tm, D), jnp.float32)],
        ),
        compiler_params=pltpu.CompilerParams(
            dimension_semantics=("parallel", "arbitrary")),
    )

    e = ebds
    acc = ebds
    for _ in range(num_layers):
        e, acc = layer_fn(adj_bf16, e, acc)
    return acc


# --------------------------------------------------------------------------- #
# Fused: gather(batch rows) + L2 norms + poi/image linear heads + demo MLP
#        + three scaled logits matmuls, all in one pallas_call.
# --------------------------------------------------------------------------- #

def _l2n(x):
    ss = jnp.sum(x * x, axis=1, keepdims=True)
    # rsqrt on the EUP; eps avoids NaN on an all-zero row (F.normalize-style).
    return x * jax.lax.rsqrt(jnp.maximum(ss, 1e-24))


def _fused_heads_kernel(poi_ls, demo_ls, image_ls,
                        idx_ref,                              # scalar prefetch
                        gmob_ref,                             # (N, D) in HBM
                        poi_ref, poi_w_ref, poi_b_ref,
                        demo_ref, d_w1_ref, d_b1_ref, d_w2_ref, d_b2_ref,
                        img_ref, img_w_ref, img_b_ref,
                        mob_out_ref, lpoi_ref, ldemo_ref, limg_ref,
                        mob_buf, dma_sems):
    B = mob_buf.shape[0]

    # 1) Kick off the batch-row gather DMAs (HBM -> VMEM); they overlap the
    #    head compute below.
    copies = []
    for b in range(B):  # static unroll, B is small
        cp = pltpu.make_async_copy(
            gmob_ref.at[pl.ds(idx_ref[b], 1), :],
            mob_buf.at[pl.ds(b, 1), :],
            dma_sems.at[b])
        cp.start()
        copies.append(cp)

    # 2) Encoder heads + L2 normalization (fp32, stays in VMEM/vregs).
    poi_y = jnp.dot(poi_ref[...], poi_w_ref[...],
                    preferred_element_type=jnp.float32) + poi_b_ref[...]
    poi_n = _l2n(poi_y)

    h = jnp.dot(demo_ref[...], d_w1_ref[...],
                preferred_element_type=jnp.float32) + d_b1_ref[...]
    h = jnp.maximum(h, 0.0)
    demo_y = jnp.dot(h, d_w2_ref[...],
                     preferred_element_type=jnp.float32) + d_b2_ref[...]
    demo_n = _l2n(demo_y)

    img_y = jnp.dot(img_ref[...], img_w_ref[...],
                    preferred_element_type=jnp.float32) + img_b_ref[...]
    img_n = _l2n(img_y)

    # 3) Finish the gather; emit the (un-normalized) mob embeddings and
    #    normalize for the similarity logits.
    for cp in copies:
        cp.wait()
    mob = mob_buf[...]
    mob_out_ref[...] = mob
    mob_n = _l2n(mob)

    # 4) Scaled similarity logits: scale * mob_n @ other_n.T
    dims = (((1,), (1,)), ((), ()))
    lpoi_ref[...] = poi_ls * jax.lax.dot_general(
        mob_n, poi_n, dims, preferred_element_type=jnp.float32)
    ldemo_ref[...] = demo_ls * jax.lax.dot_general(
        mob_n, demo_n, dims, preferred_element_type=jnp.float32)
    limg_ref[...] = image_ls * jax.lax.dot_general(
        mob_n, img_n, dims, preferred_element_type=jnp.float32)


def fused_heads_and_logits(global_indices, global_mob_ebd,
                           poi, poi_w_t, poi_b,
                           demo, demo_w1_t, demo_b1, demo_w2_t, demo_b2,
                           image, image_w_t, image_b,
                           *, poi_ls, demo_ls, image_ls):
    B = poi.shape[0]
    D = poi_w_t.shape[1]

    def full(shape):
        return pl.BlockSpec(shape, lambda i, idx: (0,) * len(shape))

    in_specs = [
        pl.BlockSpec(memory_space=pl.ANY),  # global mob embeddings stay in HBM
        full(poi.shape), full(poi_w_t.shape), full(poi_b.shape),
        full(demo.shape), full(demo_w1_t.shape), full(demo_b1.shape),
        full(demo_w2_t.shape), full(demo_b2.shape),
        full(image.shape), full(image_w_t.shape), full(image_b.shape),
    ]
    out_specs = [full((B, D)), full((B, B)), full((B, B)), full((B, B))]
    out_shape = (jax.ShapeDtypeStruct((B, D), jnp.float32),
                 jax.ShapeDtypeStruct((B, B), jnp.float32),
                 jax.ShapeDtypeStruct((B, B), jnp.float32),
                 jax.ShapeDtypeStruct((B, B), jnp.float32))

    kernel = functools.partial(_fused_heads_kernel, poi_ls, demo_ls, image_ls)
    return pl.pallas_call(
        kernel,
        out_shape=out_shape,
        grid_spec=pltpu.PrefetchScalarGridSpec(
            num_scalar_prefetch=1,
            grid=(1,),
            in_specs=in_specs,
            out_specs=out_specs,
            scratch_shapes=[pltpu.VMEM((B, D), jnp.float32),
                            pltpu.SemaphoreType.DMA((B,))],
        ),
        compiler_params=pltpu.CompilerParams(
            dimension_semantics=("arbitrary",)),
    )(global_indices, global_mob_ebd,
      poi, poi_w_t, poi_b,
      demo, demo_w1_t, demo_b1, demo_w2_t, demo_b2,
      image, image_w_t, image_b)


# --------------------------------------------------------------------------- #
# Model wrapper
# --------------------------------------------------------------------------- #

def mobclip_forward(params, batch, mob_adj, global_indices):
    # LightGCN over the full mobility graph (tiled Pallas kernels).
    # TODO(synk): torch.spmm's sparse adjacency is realized as a dense tiled
    # matmul; a CSR/blocked-sparse kernel would be needed for truly sparse adj.
    global_mob_ebd = lightgcn(mob_adj, params["mob_features"],
                              params["gnn_layers"])

    # logit_scale = exp(log(1/scale)) = 1/scale (compile-time constant here).
    poi_ls = 1.0 / params["poi_scale"]
    demo_ls = 1.0 / params["demo_scale"]
    image_ls = 1.0 / params["image_scale"]

    mob_ebd, l_poi, l_demo, l_img = fused_heads_and_logits(
        global_indices.astype(jnp.int32), global_mob_ebd,
        batch["poi"], params["poi_w_t"], params["poi_b"],
        batch["demo"], params["demo_w1_t"], params["demo_b1"],
        params["demo_w2_t"], params["demo_b2"],
        batch["image"], params["image_w_t"], params["image_b"],
        poi_ls=poi_ls, demo_ls=demo_ls, image_ls=image_ls)

    logits = {
        "logits_per_mob_poi": l_poi,
        "logits_per_poi_mob": l_poi.T,
        "logits_per_mob_demo": l_demo,
        "logits_per_demo_mob": l_demo.T,
        "logits_per_mob_image": l_img,
        "logits_per_image_mob": l_img.T,
    }
    return logits, mob_ebd


# ------------------------------ param init --------------------------------- #

def _kaiming_uniform(key, out_dim, in_dim):
    # nn.init.kaiming_uniform_(nonlinearity='relu'): bound = sqrt(6 / fan_in)
    bound = math.sqrt(6.0 / in_dim)
    return jax.random.uniform(key, (out_dim, in_dim), jnp.float32, -bound, bound)


def _bias_init(key, out_dim, in_dim):
    bound = 1.0 / math.sqrt(in_dim)
    return jax.random.uniform(key, (1, out_dim), jnp.float32, -bound, bound)


def make_params(key, *, n_nodes, poi_dim, demo_dim, image_dim,
                demo_hidden_dim, embedding_dim, gnn_layers,
                poi_scale, demo_scale, image_scale):
    keys = jax.random.split(key, 10)
    # mob features must live in embedding_dim so mob @ poi.T type-checks.
    mob_features = jax.random.normal(keys[0], (n_nodes, embedding_dim),
                                     jnp.float32)

    poi_w = _kaiming_uniform(keys[1], embedding_dim, poi_dim)
    poi_b = _bias_init(keys[2], embedding_dim, poi_dim)
    demo_w1 = _kaiming_uniform(keys[3], demo_hidden_dim, demo_dim)
    demo_b1 = _bias_init(keys[4], demo_hidden_dim, demo_dim)
    demo_w2 = _kaiming_uniform(keys[5], embedding_dim, demo_hidden_dim)
    demo_b2 = _bias_init(keys[6], embedding_dim, demo_hidden_dim)
    image_w = _kaiming_uniform(keys[7], embedding_dim, image_dim)
    image_b = _bias_init(keys[8], embedding_dim, image_dim)

    return {
        "mob_features": mob_features,
        "gnn_layers": gnn_layers,
        "poi_w_t": poi_w.T, "poi_b": poi_b,
        "demo_w1_t": demo_w1.T, "demo_b1": demo_b1,
        "demo_w2_t": demo_w2.T, "demo_b2": demo_b2,
        "image_w_t": image_w.T, "image_b": image_b,
        "poi_scale": poi_scale, "demo_scale": demo_scale,
        "image_scale": image_scale,
    }


# --------------------------------- main ------------------------------------ #

if __name__ == "__main__":
    key = jax.random.PRNGKey(0)
    k_param, k_adj, k_poi, k_demo, k_img, k_idx = jax.random.split(key, 6)

    N_NODES = 16
    BATCH = 8
    POI_DIM = 32
    DEMO_DIM = 16
    IMAGE_DIM = 64
    DEMO_HIDDEN = 32
    EMBED_DIM = 32
    GNN_LAYERS = 2

    params = make_params(
        k_param,
        n_nodes=N_NODES, poi_dim=POI_DIM, demo_dim=DEMO_DIM,
        image_dim=IMAGE_DIM, demo_hidden_dim=DEMO_HIDDEN,
        embedding_dim=EMBED_DIM, gnn_layers=GNN_LAYERS,
        poi_scale=0.07, demo_scale=0.07, image_scale=0.07,
    )

    # Dense row-normalized adjacency (torch.spmm's sparse adj realised densely).
    raw_adj = jax.random.uniform(k_adj, (N_NODES, N_NODES), jnp.float32)
    mob_adj = raw_adj / jnp.sum(raw_adj, axis=1, keepdims=True)

    batch = {
        "poi": jax.random.normal(k_poi, (BATCH, POI_DIM), jnp.float32),
        "demo": jax.random.normal(k_demo, (BATCH, DEMO_DIM), jnp.float32),
        "image": jax.random.normal(k_img, (BATCH, IMAGE_DIM), jnp.float32),
    }
    global_indices = jax.random.permutation(k_idx, N_NODES)[:BATCH]

    logits, mob_ebd = mobclip_forward(params, batch, mob_adj, global_indices)
    jax.block_until_ready((logits, mob_ebd))

    # ---- sanity checks against a plain-JAX fp32 reference -------------------
    # LightGCN (Pallas uses bf16 MXU inputs with fp32 accumulation -> loose tol)
    e = params["mob_features"]
    acc = e
    for _ in range(GNN_LAYERS):
        e = mob_adj @ e
        acc = acc + e
    ref_mob = jnp.take(acc, global_indices, axis=0)
    assert jnp.allclose(ref_mob, mob_ebd, atol=5e-2, rtol=5e-2), (
        "LightGCN mismatch")

    # Heads / logits reference built from the Pallas mob embeddings (fp32 path).
    def l2n(x):
        return x / jnp.linalg.norm(x, axis=1, keepdims=True)

    mob_n = l2n(mob_ebd)
    poi_n = l2n(batch["poi"] @ params["poi_w_t"] + params["poi_b"])
    demo_h = jnp.maximum(batch["demo"] @ params["demo_w1_t"]
                         + params["demo_b1"], 0.0)
    demo_n = l2n(demo_h @ params["demo_w2_t"] + params["demo_b2"])
    img_n = l2n(batch["image"] @ params["image_w_t"] + params["image_b"])

    ref_lpoi = (1.0 / 0.07) * mob_n @ poi_n.T
    ref_ldemo = (1.0 / 0.07) * mob_n @ demo_n.T
    ref_limg = (1.0 / 0.07) * mob_n @ img_n.T
    assert jnp.allclose(logits["logits_per_mob_poi"], ref_lpoi,
                        atol=2e-2, rtol=2e-2)
    assert jnp.allclose(logits["logits_per_mob_demo"], ref_ldemo,
                        atol=2e-2, rtol=2e-2)
    assert jnp.allclose(logits["logits_per_mob_image"], ref_limg,
                        atol=2e-2, rtol=2e-2)
    assert jnp.allclose(logits["logits_per_poi_mob"],
                        logits["logits_per_mob_poi"].T)

    expected_shapes = {
        "logits_per_mob_poi": (BATCH, BATCH),
        "logits_per_poi_mob": (BATCH, BATCH),
        "logits_per_mob_demo": (BATCH, BATCH),
        "logits_per_demo_mob": (BATCH, BATCH),
        "logits_per_mob_image": (BATCH, BATCH),
        "logits_per_image_mob": (BATCH, BATCH),
    }
    for name, shp in expected_shapes.items():
        assert logits[name].shape == shp, (name, logits[name].shape)
    assert mob_ebd.shape == (BATCH, EMBED_DIM)

    print("KERNEL_OK")
</pallas_src>

<mosaic_0001>
module attributes {stable_mosaic.version = 11 : i64} {
  func.func @_gcn_layer_kernel(%arg0: i32, %arg1: i32, %arg2: memref<16x16xbf16, #tpu.memory_space<vmem>>, %arg3: memref<16x32xf32, #tpu.memory_space<vmem>>, %arg4: memref<16x32xf32, #tpu.memory_space<vmem>>, %arg5: memref<16x32xf32, #tpu.memory_space<vmem>>, %arg6: memref<16x32xf32, #tpu.memory_space<vmem>>, %arg7: memref<16x32xf32, #tpu.memory_space<vmem>>) attributes {dimension_semantics = [#tpu.dimension_semantics<parallel>, #tpu.dimension_semantics<arbitrary>], iteration_bounds = array<i64: 1, 1>, scalar_prefetch = 0 : i64, scratch_operands = 1 : i64, tpu.core_type = #tpu.core_type<tc>, window_params = [{transform_indices = @transform_0, window_bounds = array<i64: 16, 16>}, {transform_indices = @transform_1, window_bounds = array<i64: 16, 32>}, {transform_indices = @transform_2, window_bounds = array<i64: 16, 32>}, {transform_indices = @transform_3, window_bounds = array<i64: 16, 32>}, {transform_indices = @transform_4, window_bounds = array<i64: 16, 32>}]} {
    %c0_i32 = arith.constant 0 : i32
    %0 = arith.cmpi eq, %arg1, %c0_i32 : i32
    %1 = arith.extui %0 : i1 to i32
    %c0_i32_0 = arith.constant 0 : i32
    %2 = arith.cmpi ne, %1, %c0_i32_0 : i32
    scf.if %2 {
      %cst_10 = arith.constant 0.000000e+00 : f32
      %13 = vector.broadcast %cst_10 : f32 to vector<16x32xf32>
      %c0_11 = arith.constant 0 : index
      %c0_12 = arith.constant 0 : index
      %14 = vector.load %arg7[%c0_11, %c0_12] : memref<16x32xf32, #tpu.memory_space<vmem>>, vector<16x32xf32>
      tpu.vector_store %arg7[%c0_11, %c0_12], %13 {strides = array<i32>} : memref<16x32xf32, #tpu.memory_space<vmem>>, vector<16x32xf32>,
    } else {
    }
    %c0 = arith.constant 0 : index
    %c0_1 = arith.constant 0 : index
    %3 = vector.load %arg7[%c0, %c0_1] : memref<16x32xf32, #tpu.memory_space<vmem>>, vector<16x32xf32>
    %c0_2 = arith.constant 0 : index
    %c0_3 = arith.constant 0 : index
    %4 = vector.load %arg2[%c0_2, %c0_3] : memref<16x16xbf16, #tpu.memory_space<vmem>>, vector<16x16xbf16>
    %c0_4 = arith.constant 0 : index
    %c0_5 = arith.constant 0 : index
    %5 = vector.load %arg3[%c0_4, %c0_5] : memref<16x32xf32, #tpu.memory_space<vmem>>, vector<16x32xf32>
    %6 = arith.truncf %5 : vector<16x32xf32> to vector<16x32xbf16>
    %cst = arith.constant dense<0.000000e+00> : vector<16x32xf32>
    %7 = tpu.matmul %4, %6, %cst {dimension_numbers = #tpu.dot_dimension_numbers<[1], [0], [0], [1], [0, 0, 1, 1], [], []>} : vector<16x16xbf16>, vector<16x32xbf16>, vector<16x32xf32> -> vector<16x32xf32>
    %8 = arith.addf %3, %7 : vector<16x32xf32>
    %c0_6 = arith.constant 0 : index
    %c0_7 = arith.constant 0 : index
    %9 = vector.load %arg7[%c0_6, %c0_7] : memref<16x32xf32, #tpu.memory_space<vmem>>, vector<16x32xf32>
    tpu.vector_store %arg7[%c0_6, %c0_7], %8 {strides = array<i32>} : memref<16x32xf32, #tpu.memory_space<vmem>>, vector<16x32xf32>,
    %c0_i32_8 = arith.constant 0 : i32
    %10 = arith.cmpi eq, %arg1, %c0_i32_8 : i32
    %11 = arith.extui %10 : i1 to i32
    %c0_i32_9 = arith.constant 0 : i32
    %12 = arith.cmpi ne, %11, %c0_i32_9 : i32
    scf.if %12 {
      %c0_10 = arith.constant 0 : index
      %c0_11 = arith.constant 0 : index
      %13 = vector.load %arg7[%c0_10, %c0_11] : memref<16x32xf32, #tpu.memory_space<vmem>>, vector<16x32xf32>
      %c0_12 = arith.constant 0 : index
      %c0_13 = arith.constant 0 : index
      %14 = vector.load %arg5[%c0_12, %c0_13] : memref<16x32xf32, #tpu.memory_space<vmem>>, vector<16x32xf32>
      tpu.vector_store %arg5[%c0_12, %c0_13], %13 {strides = array<i32>} : memref<16x32xf32, #tpu.memory_space<vmem>>, vector<16x32xf32>,
      %c0_14 = arith.constant 0 : index
      %c0_15 = arith.constant 0 : index
      %15 = vector.load %arg4[%c0_14, %c0_15] : memref<16x32xf32, #tpu.memory_space<vmem>>, vector<16x32xf32>
      %16 = arith.addf %15, %13 : vector<16x32xf32>
      %c0_16 = arith.constant 0 : index
      %c0_17 = arith.constant 0 : index
      %17 = vector.load %arg6[%c0_16, %c0_17] : memref<16x32xf32, #tpu.memory_space<vmem>>, vector<16x32xf32>
      tpu.vector_store %arg6[%c0_16, %c0_17], %16 {strides = array<i32>} : memref<16x32xf32, #tpu.memory_space<vmem>>, vector<16x32xf32>,
    } else {
    }
    return
  }
  func.func @transform_0(%arg0: i32, %arg1: i32) -> (i32, i32) {
    %c0_i32 = arith.constant 0 : i32
    return %arg0, %arg1 : i32, i32
  }
  func.func @transform_1(%arg0: i32, %arg1: i32) -> (i32, i32) {
    %c0_i32 = arith.constant 0 : i32
    %c0_i32_0 = arith.constant 0 : i32
    return %arg1, %c0_i32 : i32, i32
  }
  func.func @transform_2(%arg0: i32, %arg1: i32) -> (i32, i32) {
    %c0_i32 = arith.constant 0 : i32
    %c0_i32_0 = arith.constant 0 : i32
    return %arg0, %c0_i32 : i32, i32
  }
  func.func @transform_3(%arg0: i32, %arg1: i32) -> (i32, i32) {
    %c0_i32 = arith.constant 0 : i32
    %c0_i32_0 = arith.constant 0 : i32
    return %arg0, %c0_i32 : i32, i32
  }
  func.func @transform_4(%arg0: i32, %arg1: i32) -> (i32, i32) {
    %c0_i32 = arith.constant 0 : i32
    %c0_i32_0 = arith.constant 0 : i32
    return %arg0, %c0_i32 : i32, i32
  }
}

</mosaic_0001>

<bundles_post_ra>
// kernel: tpu_custom_call.1
= control target key start
LH: loop header
LB: loop body
LE: loop exit
PB: predicated region body
PF: predicated region fallthrough
CT: control target
= control target key end

     0   :  { %10 = vsyncpa [#allocation4], 0  ;;  %s439_s0 = inlined_call_operand.hbm [shape: bf16[16,16], index: 0, kind: input, shape index: {}]   ;;  %s440_s1 = inlined_call_operand.hbm [shape: f32[16,32], index: 1, kind: input, shape index: {}]   ;;  %s441_s2 = inlined_call_operand.hbm [shape: f32[16,32], index: 2, kind: input, shape index: {}]   ;;  %s442_s3 = inlined_call_operand.hbm [shape: f32[16,32], index: 3, kind: output, shape index: {0}]   ;;  %s443_s4 = inlined_call_operand.hbm [shape: f32[16,32], index: 4, kind: output, shape index: {1}]  }
   0x1   :  { %11 = vsyncpa [#allocation7], 0 }
   0x2   :  { %12 = vsyncpa [#allocation5], 0 }
   0x3   :  { %13 = vsyncpa [#allocation11], 0  ;;  %s316_s15 = smov [#allocation6]   ;;  %s198_s19 = scalar_lea.hbm %s440_s1, 256 }
   0x4   :  { %s31_s16 = sshll.u32 %s316_s15, 4  ;;  %p199_p0 = scmp.ne.s32.totalorder %s440_s1, %s198_s19  ;;  %s32_s16 = int_to_ptr.vmem [resolvable:$true] %s31_s16 }
   0x5   :  { %p202_p1 = scmp.lt.u32.totalorder %s198_s19, %s440_s1 }
   0x7   :  { %p204_p2 = pnand %p202_p1, %p199_p0 }
   0x9   :  { %207 = shalt.err (!%p204_p2)
}
   0xa   :  { %s208_s24 = scalar_lea.vmem %s32_s16, 256  ;;  %p213_p4 = scmp.lt.s32.totalorder %s32_s16, %s32_s16 }
   0xb   :  { %p209_p3 = scmp.ne.s32.totalorder %s32_s16, %s208_s24  ;;  %p214_p5 = scmp.lt.s32.totalorder %s208_s24, %s208_s24 }
   0xd   :  { %p215_p6 = por %p214_p5, %p213_p4 }
   0xf   :  { %p216_p7 = pnand %p215_p6, %p209_p3 }
  0x11   :  { %219 = shalt.err (!%p216_p7)
}
  0x12   :  { %s317_s25 = smov 128   ;;  %s318_s26 = smov 8  }
  0x13   :  { %37 = dma.hbm_to_vmem [thread:$0]  %s440_s1, 256, %s32_s16, [#allocation7], %s317_s25, %s317_s25, %s318_s26  }
  0x14   :  { %s319_s29 = smov [#allocation3]   ;;  %s220_s7 = scalar_lea.hbm %s439_s0, 128 }
  0x15   :  { %s19_s30 = sshll.u32 %s319_s29, 4  ;;  %p221_p8 = scmp.ne.s32.totalorder %s439_s0, %s220_s7  ;;  %s20_s30 = int_to_ptr.vmem [resolvable:$true] %s19_s30 }
  0x16   :  { %p224_p9 = scmp.lt.u32.totalorder %s220_s7, %s439_s0 }
  0x18   :  { %p226_p10 = pnand %p224_p9, %p221_p8 }
  0x1a   :  { %229 = shalt.err (!%p226_p10)
}
  0x1b   :  { %s230_s12 = scalar_lea.vmem %s20_s30, 128  ;;  %p235_p12 = scmp.lt.s32.totalorder %s20_s30, %s20_s30 }
  0x1c   :  { %p231_p11 = scmp.ne.s32.totalorder %s20_s30, %s230_s12  ;;  %p236_p13 = scmp.lt.s32.totalorder %s230_s12, %s230_s12 }
  0x1e   :  { %p237_p0 = por %p236_p13, %p235_p12 }
  0x20   :  { %p238_p1 = pnand %p237_p0, %p231_p11 }
  0x22   :  { %241 = shalt.err (!%p238_p1)
}
  0x23   :  { %s320_s1 = smov 64   ;;  %s321_s13 = smov 4  }
  0x24   :  { %25 = dma.hbm_to_vmem [thread:$0]  %s439_s0, 128, %s20_s30, [#allocation4], %s320_s1, %s320_s1, %s321_s13  }
  0x25   :  { %s322_s16 = smov [#allocation8]   ;;  %s242_s20 = scalar_lea.hbm %s441_s2, 256 }
  0x26   :  { %s43_s17 = sshll.u32 %s322_s16, 4  ;;  %p243_p2 = scmp.ne.s32.totalorder %s441_s2, %s242_s20  ;;  %s44_s17 = int_to_ptr.vmem [resolvable:$true] %s43_s17 }
  0x27   :  { %p246_p3 = scmp.lt.u32.totalorder %s242_s20, %s441_s2 }
  0x29   :  { %p248_p4 = pnand %p246_p3, %p243_p2 }
  0x2b   :  { %251 = shalt.err (!%p248_p4)
}
  0x2c   :  { %s252_s27 = scalar_lea.vmem %s44_s17, 256  ;;  %p257_p6 = scmp.lt.s32.totalorder %s44_s17, %s44_s17 }
  0x2d   :  { %p253_p5 = scmp.ne.s32.totalorder %s44_s17, %s252_s27  ;;  %p258_p7 = scmp.lt.s32.totalorder %s252_s27, %s252_s27 }
  0x2f   :  { %p259_p8 = por %p258_p7, %p257_p6 }
  0x31   :  { %p260_p9 = pnand %p259_p8, %p253_p5 }
  0x33   :  { %263 = shalt.err (!%p260_p9)
}
  0x34   :  { %49 = dma.hbm_to_vmem [thread:$0]  %s441_s2, 256, %s44_s17, [#allocation7], %s317_s25, %s317_s25, %s318_s26  }
  0x35   :  { %308 = dma.done.wait [#allocation4], 128  }
  0x36   :  { %309 = vsyncadd [#allocation4], 4294967168 }
  0x37   :  { %310 = dma.done.wait [#allocation7], 512  }
  0x38   :  { %311 = vsyncadd [#allocation7], 4294966784  ;;  %vm64_vm0 = vcmask 261120   ;;  %v323_v0 = vmov 0.0   ;;  %vm324_vm1 = vmmov 0   ;;  %v71_v1 = vld [vmem:[#allocation6] sm:$0xff] }
  0x39   :  { %65 = vst.msk [vmem:[#allocation2] sm:$0xff] %vm64_vm0, %v323_v0  ;;  %66 = vst.msk [vmem:[#allocation2 + $0x8] sm:$0xff] %vm64_vm0, %v323_v0  ;;  %180 = vmatprep.subr.bf16.mxu0 %v323_v0  ;;  %182 = vmatprep.mubr.msk.bf16.mxu0 %vm324_vm1, %v323_v0  ;;  %v72_v2 = vld [vmem:[#allocation6 + $0x8] sm:$0xff]  ;;  %v197_v4 = vld [vmem:[#allocation3] sm:$0xff]   ;;  %vm79_vm2 = vcmask 130048   ;;  %s325_s2 = smov [#allocation9]  }
  0x3a   :  { %v73_v3 = vpack.c.bf16 %v72_v2, %v71_v1  ;;  %v136_v13 = vld [vmem:[#allocation8] sm:$0xff]  ;;  %s147_s29 = sshll.u32 %s325_s2, 4  ;;  %v137_v15 = vld [vmem:[#allocation8 + $0x8] sm:$0xff]  ;;  %s326_s30 = smov [#allocation10]   ;;  %s148_s29 = int_to_ptr.vmem [resolvable:$true] %s147_s29 }
  0x3b   :  { %s159_s5 = sshll.u32 %s326_s30, 4  ;;  %s264_s6 = scalar_lea.vmem %s148_s29, 256  ;;  %s401_s5 = int_to_ptr.vmem [resolvable:$true] %s159_s5 }
  0x3c   :  { %181 = vmatpush3.bf16.msra.mxu0 %v73_v3  ;;  %p265_p10 = scmp.ne.s32.totalorder %s148_s29, %s264_s6  ;;  %p269_p11 = scmp.lt.s32.totalorder %s148_s29, %s148_s29 }
  0x3d   :  { %p270_p12 = scmp.lt.s32.totalorder %s264_s6, %s264_s6 }
  0x3f   :  { %183 = vmatmul.mubr.msk.bf16.vlgmr.msra.gmra.mrb[0].mxu0 %vm79_vm2, %v197_v4  ;;  %p271_p13 = por %p270_p12, %p269_p11 }
  0x40   :  { %v67_v5 = vld [vmem:[#allocation2] sm:$0xff]  ;;  %v68_v7 = vld [vmem:[#allocation2 + $0x8] sm:$0xff] }
  0x41   :  { %p272_p0 = pnand %p271_p13, %p265_p10 }
 0x112   :  { %v117_v6 = vpop.f32.mrb[0].mxu0 }
 0x113   :  { %v124_v8 = vadd.f32 %v117_v6, %v67_v5  ;;  %v184_v9 = vpop.f32.mrb[1].mxu0 }
 0x114   :  { %v120_v10 = vpop.f32.mrb[2].mxu0 }
 0x115   :  { %127 = vst.msk [vmem:[#allocation2] sm:$0xff] %vm64_vm0, %v124_v8  ;;  %v125_v11 = vadd.f32 %v120_v10, %v68_v7  ;;  %v185_v12 = vpop.f32.mrb[3].mxu0 }
 0x117   :  { %128 = vst.msk [vmem:[#allocation2 + $0x8] sm:$0xff] %vm64_vm0, %v125_v11 }
 0x11c   :  { %v132_v14 = vld [vmem:[#allocation2] sm:$0xff] }
 0x11d   :  { %134 = vst.msk [vmem:[#allocation9] sm:$0xff] %vm64_vm0, %v132_v14  ;;  %v138_v16 = vadd.f32 %v136_v13, %v132_v14 }
 0x11e   :  { %v133_v17 = vld [vmem:[#allocation2 + $0x8] sm:$0xff] }
 0x11f   :  { %135 = vst.msk [vmem:[#allocation9 + $0x8] sm:$0xff] %vm64_vm0, %v133_v17  ;;  %v139_v18 = vadd.f32 %v137_v15, %v133_v17  ;;  %140 = vst.msk [vmem:[#allocation10] sm:$0xff] %vm64_vm0, %v138_v16 }
 0x120   :  { %275 = shalt.err (!%p272_p0)
}
 0x121   :  { %s276_s9 = scalar_lea.hbm %s442_s3, 256 }
 0x122   :  { %p277_p1 = scmp.ne.s32.totalorder %s442_s3, %s276_s9  ;;  %p280_p2 = scmp.lt.u32.totalorder %s276_s9, %s442_s3 }
 0x124   :  { %p282_p3 = pnand %p280_p2, %p277_p1 }
 0x126   :  { %285 = shalt.err (!%p282_p3)
}
 0x127   :  { %153 = dma.vmem_to_hbm [thread:$0]  %s148_s29, 256, %s442_s3, [#allocation5], %s317_s25, %s317_s25, %s318_s26   ;;  %141 = vst.msk [vmem:[#allocation10 + $0x8] sm:$0xff] %vm64_vm0, %v139_v18 }
 0x128   :  { %s286_s15 = scalar_lea.vmem %s401_s5, 256  ;;  %p291_p5 = scmp.lt.s32.totalorder %s401_s5, %s401_s5 }
 0x129   :  { %p287_p4 = scmp.ne.s32.totalorder %s401_s5, %s286_s15  ;;  %p292_p6 = scmp.lt.s32.totalorder %s286_s15, %s286_s15 }
 0x12b   :  { %p293_p7 = por %p292_p6, %p291_p5 }
 0x12d   :  { %p294_p8 = pnand %p293_p7, %p287_p4 }
 0x12f   :  { %297 = shalt.err (!%p294_p8)
}
 0x130   :  { %s298_s18 = scalar_lea.hbm %s443_s4, 256 }
 0x131   :  { %p299_p9 = scmp.ne.s32.totalorder %s443_s4, %s298_s18  ;;  %p302_p10 = scmp.lt.u32.totalorder %s298_s18, %s443_s4 }
 0x133   :  { %p304_p11 = pnand %p302_p10, %p299_p9 }
 0x135   :  { %307 = shalt.err (!%p304_p11)
}
 0x136   :  { %165 = dma.vmem_to_hbm [thread:$0]  %s401_s5, 256, %s443_s4, [#allocation11], %s317_s25, %s317_s25, %s318_s26  }
 0x137   :  { %312 = dma.done.wait [#allocation5], 256  }
 0x138   :  { %313 = vsyncadd [#allocation5], 4294967040 }
 0x139   :  { %314 = dma.done.wait [#allocation11], 256  }
 0x13a   :  { %315 = vsyncadd [#allocation11], 4294967040 }
 0x13b   :  { %172 = vsyncpa [#allocation4], 1 }
 0x13c   :  { %173 = vsyncpa [#allocation7], 1 }
 0x13d   :  { %174 = vsyncpa [#allocation5], 1 }
 0x13e   :  { %175 = vsyncpa [#allocation11], 1 }

</bundles_post_ra>
